<compile_context>
chip_gen: v7x
topology: tpu7x:2x2x1
jax: 0.10.0
libtpu: 0.0.40
codegen_flags: <defaults>
</compile_context>

<pallas_src>
from functools import partial

import jax
import jax.numpy as jnp
from jax import lax
from jax.experimental import pallas as pl
from jax.experimental.pallas import tpu as pltpu


def _round_up(x, m):
    return (x + m - 1) // m * m


def _physical_vmem_bytes():
    try:
        return int(pltpu.get_tpu_info().vmem_capacity_bytes)
    except Exception:
        return 64 * 1024 * 1024  # conservative fallback (v7x per-TensorCore)


def _default_max_tile_l(c_in, cp, itemsize, vmem_cap):
    """Largest L-tile whose steady-state VMEM footprint stays well under budget."""
    # Rough per-row bytes: x tile (2 bufs) + out tile (2 bufs) + (tl, 4cp) f32
    # matmul product + ~3 (tl, cp) f32 temporaries (rolled taps / y_even / y_odd).
    per_row = 2 * c_in * itemsize + 4 * cp * itemsize + 7 * cp * 4
    budget = max(vmem_cap // 3, 8 * 1024 * 1024)
    return int(max(128, min(1024, budget // max(per_row, 1))))


def _pick_tiling(length, max_tile, quantum):
    """Return (tile, padded_length).  tile is a multiple of `quantum` unless it
    covers the whole (unpadded) length; padded_length is a multiple of tile."""
    max_tile = max(quantum, (max_tile // quantum) * quantum)
    if length <= max_tile:
        return length, length
    floor = max(quantum, (max_tile // 2 // quantum) * quantum)
    t = max_tile
    while t >= floor:                 # prefer an exact divisor near the target
        if length % t == 0:
            return t, length
        t -= quantum
    return max_tile, _round_up(length, max_tile)   # otherwise pad the length


def _grid_constant_spec(shape):
    """BlockSpec for a grid-invariant operand; single-buffered when supported."""
    index_map = lambda b, l: (0,) * len(shape)
    try:
        return pl.BlockSpec(shape, index_map,
                            pipeline_mode=pl.Buffered(buffer_count=1))
    except Exception:                 # older jax without pipeline_mode support
        return pl.BlockSpec(shape, index_map)


def _upsample1d_kernel(x_ref, h_ref, w_ref, b_ref, o_ref, *,
                       cp, c_out, tl, channels_first, compute_dtype):
    """One (batch, L-tile) grid step.

    channels_first:
      x_ref: (1, C, tl)    h_ref: (1, 1, C, 2)  (col 0 = x[l*tl-1], col 1 = x[(l+1)*tl])
    else:
      x_ref: (1, tl, C)    h_ref: (1, 1, 2, C)  (row 0 = prev, row 1 = next)
    w_ref : (C, 4*cp)   taps packed on the N axis [W0 | W1 | W2 | W3], lane-padded
    b_ref : (1, cp)     bias (f32, lane-padded)
    o_ref : (1, 2, tl, c_out)   plane 0 = y[2m], plane 1 = y[2m+1]
    """
    w = w_ref[...]
    bias = b_ref[...]

    if channels_first:
        x = x_ref[0]                 # (C, tl)
        halo = h_ref[0, 0]           # (C, 2)
        if compute_dtype is not None:
            x = x.astype(compute_dtype)
            halo = halo.astype(compute_dtype)
        dn = (((0,), (0,)), ((), ()))      # contract on the channel axis of x
        p = lax.dot_general(x, w, dn, preferred_element_type=jnp.float32)     # (tl, 4cp)
        hp = lax.dot_general(halo, w, dn, preferred_element_type=jnp.float32)  # (2, 4cp)
    else:
        x = x_ref[0]                 # (tl, C)
        halo = h_ref[0, 0]           # (2, C)
        if compute_dtype is not None:
            x = x.astype(compute_dtype)
            halo = halo.astype(compute_dtype)
        p = jnp.dot(x, w, preferred_element_type=jnp.float32)                 # (tl, 4cp)
        hp = jnp.dot(halo, w, preferred_element_type=jnp.float32)             # (2, 4cp)

    p0 = p[:, 0 * cp:1 * cp]         # x[m] @ W0   (128-lane aligned slices)
    p1 = p[:, 1 * cp:2 * cp]         # x[m] @ W1
    p2 = p[:, 2 * cp:3 * cp]         # x[m] @ W2
    p3 = p[:, 3 * cp:4 * cp]         # x[m] @ W3
    prev3 = hp[0:1, 3 * cp:4 * cp]   # x[l*tl - 1]   @ W3   (zeros outside sequence)
    next0 = hp[1:2, 0 * cp:1 * cp]   # x[(l+1)*tl]   @ W0

    row = lax.broadcasted_iota(jnp.int32, (tl, 1), 0)
    # row m of p3s = x[m-1] @ W3 ; row 0 comes from the halo.
    p3s = jnp.where(row == 0, prev3, pltpu.roll(p3, shift=1, axis=0))
    # row m of p0s = x[m+1] @ W0 ; last row comes from the halo.
    p0s = jnp.where(row == tl - 1, next0, pltpu.roll(p0, shift=tl - 1, axis=0))

    y_even = p1 + p3s + bias         # y[2m]
    y_odd = p2 + p0s + bias          # y[2m+1]
    o_ref[0, 0] = y_even[:, :c_out].astype(o_ref.dtype)
    o_ref[0, 1] = y_odd[:, :c_out].astype(o_ref.dtype)


def _upsample1d_raw(x, weight, bias, *, channels_first, max_tile_l=None,
                    compute_dtype=None, vmem_limit_bytes=None):
    """Run the kernel; returns (B, 2, Lp, C_out) even/odd output planes."""
    if channels_first:
        B, C, L = x.shape
    else:
        B, L, C = x.shape
    C_in, C_out, K = weight.shape
    assert K == 4 and C_in == C, (weight.shape, x.shape)

    cp = _round_up(C_out, 128)                 # lane-pad N so tap slices align
    itemsize = jnp.dtype(x.dtype).itemsize
    phys_vmem = _physical_vmem_bytes()
    if vmem_limit_bytes is None:               # ~48 MiB on v7x, ~96 MiB on v5e/v6e
        vmem_limit_bytes = max(32 * 1024 * 1024, (3 * phys_vmem) // 4)
    if max_tile_l is None:
        max_tile_l = _default_max_tile_l(C_in, cp, itemsize, phys_vmem)

    # tl lives in the lane dim of the x block for channels-first input (needs a
    # 128 quantum when tiling), in the sublane dim otherwise (8 quantum).
    quantum = 128 if channels_first else 8
    if B == 1 and L >= 2 * quantum:            # keep both v7x TensorCores busy
        max_tile_l = min(max_tile_l, max(quantum, _round_up((L + 1) // 2, quantum)))
    tl, Lp = _pick_tiling(L, max_tile_l, quantum)
    nt = Lp // tl

    if Lp > L:  # pad awkward lengths with zero rows; the caller trims the output
        pad = Lp - L
        x = jnp.pad(x, ((0, 0), (0, 0), (0, pad)) if channels_first
                    else ((0, 0), (0, pad), (0, 0)))

    # Pack the 4 taps along the matmul N axis: w_all[:, k*cp:(k+1)*cp] = W_k.
    w_all = jnp.transpose(weight, (0, 2, 1))                       # (C_in, 4, C_out)
    w_all = jnp.pad(w_all, ((0, 0), (0, 0), (0, cp - C_out))).reshape(C_in, 4 * cp)
    if compute_dtype is not None:
        w_all = w_all.astype(compute_dtype)
    b_pad = jnp.pad(bias, (0, cp - C_out)).reshape(1, cp).astype(jnp.float32)

    # Per-tile halo rows: x[l*tl - 1] (prev) and x[(l+1)*tl] (next); zeros
    # outside the (padded) sequence.  Tiny side arrays, one 1-row block per step.
    if channels_first:
        zero = jnp.zeros((B, C, 1), x.dtype)
        if nt > 1:
            prev = jnp.concatenate([zero, x[:, :, tl - 1:Lp - 1:tl]], axis=2)
            nxt = jnp.concatenate([x[:, :, tl:Lp:tl], zero], axis=2)
        else:
            prev, nxt = zero, zero
        halo = jnp.transpose(jnp.stack([prev, nxt], axis=-1), (0, 2, 1, 3))  # (B, nt, C, 2)
        x_spec = pl.BlockSpec((1, C, tl), lambda b, l: (b, 0, l))
        h_spec = pl.BlockSpec((1, 1, C, 2), lambda b, l: (b, l, 0, 0))
    else:
        zero = jnp.zeros((B, 1, C), x.dtype)
        if nt > 1:
            prev = jnp.concatenate([zero, x[:, tl - 1:Lp - 1:tl, :]], axis=1)
            nxt = jnp.concatenate([x[:, tl:Lp:tl, :], zero], axis=1)
        else:
            prev, nxt = zero, zero
        halo = jnp.stack([prev, nxt], axis=2)                                # (B, nt, 2, C)
        x_spec = pl.BlockSpec((1, tl, C), lambda b, l: (b, l, 0))
        h_spec = pl.BlockSpec((1, 1, 2, C), lambda b, l: (b, l, 0, 0))

    out = pl.pallas_call(
        partial(_upsample1d_kernel, cp=cp, c_out=C_out, tl=tl,
                channels_first=channels_first, compute_dtype=compute_dtype),
        out_shape=jax.ShapeDtypeStruct((B, 2, Lp, C_out), x.dtype),
        grid_spec=pltpu.PrefetchScalarGridSpec(
            num_scalar_prefetch=0,
            grid=(B, nt),
            in_specs=[
                x_spec,
                h_spec,
                _grid_constant_spec((C_in, 4 * cp)),   # weight: single-buffered
                _grid_constant_spec((1, cp)),          # bias:   single-buffered
            ],
            out_specs=pl.BlockSpec((1, 2, tl, C_out), lambda b, l: (b, 0, l, 0)),
        ),
        compiler_params=pltpu.CompilerParams(
            dimension_semantics=("parallel", "parallel"),
            vmem_limit_bytes=int(vmem_limit_bytes),
        ),
    )(x, halo, w_all, b_pad)
    return out


def upsample1d(x_ncl, weight, bias, **kwargs):
    """PyTorch-layout entry point: x (B, C, L) -> (B, C, 2L).

    weight: (C_in, C_out, 4) (PyTorch ConvTranspose1d layout); bias: (C_out,).
    No wrapper-side input transpose; a single fused transpose+reshape on output.
    """
    B, C, L = x_ncl.shape
    C_out = weight.shape[1]
    out = _upsample1d_raw(x_ncl, weight, bias, channels_first=True, **kwargs)
    # (B, 2, Lp, C_out) -> (B, C_out, Lp, 2) -> (B, C_out, 2*Lp) -> trim (one pass).
    y = jnp.transpose(out, (0, 3, 2, 1)).reshape(B, C_out, -1)
    return y[:, :, :2 * L]


def upsample1d_nlc(x_nlc, weight, bias, **kwargs):
    """Channels-last entry point: x (B, L, C) -> (B, 2L, C) (no x transposes)."""
    B, L, C = x_nlc.shape
    C_out = weight.shape[1]
    out = _upsample1d_raw(x_nlc, weight, bias, channels_first=False, **kwargs)
    y = jnp.transpose(out, (0, 2, 1, 3)).reshape(B, -1, C_out)
    return y[:, :2 * L, :]


def _reference(x_ncl, weight, bias):
    """Pure-JAX reference for ConvTranspose1d(k=4, s=2, p=1) matching PyTorch."""
    C_in, C_out, K = weight.shape
    w_conv = jnp.transpose(weight[:, :, ::-1], (1, 0, 2))   # (C_out, C_in, K)
    y = lax.conv_general_dilated(
        x_ncl, w_conv, window_strides=(1,), padding=[(2, 2)],
        lhs_dilation=(2,), dimension_numbers=("NCH", "OIH", "NCH"))
    return y + bias.reshape(1, C_out, 1)


if __name__ == "__main__":
    key = jax.random.PRNGKey(0)
    B, C, L = 2, 4, 16
    kx, kw, kb = jax.random.split(key, 3)
    x = jax.random.normal(kx, (B, C, L), dtype=jnp.float32)
    # PyTorch ConvTranspose1d weight shape: (in_channels, out_channels, kernel_size)
    weight = jax.random.normal(kw, (C, C, 4), dtype=jnp.float32) * 0.1
    bias = jax.random.normal(kb, (C,), dtype=jnp.float32) * 0.1
    y_ref = _reference(x, weight, bias)

    # 1) PyTorch-layout path (channels-first input blocks, single tile).
    y = jax.block_until_ready(upsample1d(x, weight, bias))
    assert y.shape == (B, C, 2 * L), y.shape
    assert jnp.allclose(y, y_ref, atol=1e-5, rtol=1e-5), "NCL path mismatch"

    # 2) Channels-last path, L-tiled with halos (nt = 2).
    x_nlc = jnp.transpose(x, (0, 2, 1))
    y_nlc = jax.block_until_ready(upsample1d_nlc(x_nlc, weight, bias, max_tile_l=8))
    assert y_nlc.shape == (B, 2 * L, C), y_nlc.shape
    assert jnp.allclose(jnp.transpose(y_nlc, (0, 2, 1)), y_ref,
                        atol=1e-5, rtol=1e-5), "NLC tiled path mismatch"

    # 3) Channels-first path with L-tiling + zero-padding for an awkward length.
    B2, C2, L2 = 1, 8, 200
    x2 = jax.random.normal(kx, (B2, C2, L2), dtype=jnp.float32)
    w2 = jax.random.normal(kw, (C2, C2, 4), dtype=jnp.float32) * 0.1
    b2 = jax.random.normal(kb, (C2,), dtype=jnp.float32) * 0.1
    y2 = jax.block_until_ready(upsample1d(x2, w2, b2, max_tile_l=128))
    assert y2.shape == (B2, C2, 2 * L2), y2.shape
    assert jnp.allclose(y2, _reference(x2, w2, b2), atol=1e-5, rtol=1e-5), \
        "tiled/padded NCL path mismatch"

    # 4) Opt-in bf16 compute (f32 accumulation) — looser tolerance by design.
    y_bf16 = jax.block_until_ready(
        upsample1d(x, weight, bias, compute_dtype=jnp.bfloat16))
    assert jnp.allclose(y_bf16, y_ref, atol=3e-2, rtol=3e-2), "bf16 path mismatch"

    print("KERNEL_OK")
</pallas_src>

<mosaic_0001>
module attributes {stable_mosaic.version = 11 : i64} {
  func.func @_upsample1d_kernel(%arg0: i32, %arg1: i32, %arg2: memref<1x4x16xf32, #tpu.memory_space<vmem>>, %arg3: memref<1x1x4x2xf32, #tpu.memory_space<vmem>>, %arg4: memref<4x512xf32, #tpu.memory_space<vmem>>, %arg5: memref<1x128xf32, #tpu.memory_space<vmem>>, %arg6: memref<1x2x16x4xf32, #tpu.memory_space<vmem>>) attributes {dimension_semantics = [#tpu.dimension_semantics<parallel>, #tpu.dimension_semantics<parallel>], iteration_bounds = array<i64: 2, 1>, scalar_prefetch = 0 : i64, scratch_operands = 0 : i64, tpu.core_type = #tpu.core_type<tc>, window_params = [{transform_indices = @transform_0, window_bounds = array<i64: 1, 4, 16>}, {transform_indices = @transform_1, window_bounds = array<i64: 1, 1, 4, 2>}, {pipeline_mode = #tpu.pipeline_mode<synchronous>, transform_indices = @transform_2, window_bounds = array<i64: 4, 512>}, {pipeline_mode = #tpu.pipeline_mode<synchronous>, transform_indices = @transform_3, window_bounds = array<i64: 1, 128>}, {transform_indices = @transform_4, window_bounds = array<i64: 1, 2, 16, 4>}]} {
    %c0 = arith.constant 0 : index
    %c0_0 = arith.constant 0 : index
    %0 = vector.load %arg4[%c0, %c0_0] : memref<4x512xf32, #tpu.memory_space<vmem>>, vector<4x512xf32>
    %c0_1 = arith.constant 0 : index
    %c0_2 = arith.constant 0 : index
    %1 = vector.load %arg5[%c0_1, %c0_2] : memref<1x128xf32, #tpu.memory_space<vmem>>, vector<1x128xf32>
    %c0_3 = arith.constant 0 : index
    %c0_4 = arith.constant 0 : index
    %c0_5 = arith.constant 0 : index
    %2 = vector.load %arg2[%c0_3, %c0_4, %c0_5] : memref<1x4x16xf32, #tpu.memory_space<vmem>>, vector<1x4x16xf32>
    %3 = vector.shape_cast %2 : vector<1x4x16xf32> to vector<4x16xf32>
    %c0_6 = arith.constant 0 : index
    %c0_7 = arith.constant 0 : index
    %c0_8 = arith.constant 0 : index
    %c0_9 = arith.constant 0 : index
    %4 = vector.load %arg3[%c0_6, %c0_7, %c0_8, %c0_9] : memref<1x1x4x2xf32, #tpu.memory_space<vmem>>, vector<1x1x4x2xf32>
    %5 = vector.shape_cast %4 : vector<1x1x4x2xf32> to vector<4x2xf32>
    %cst = arith.constant dense<0.000000e+00> : vector<16x512xf32>
    %6 = tpu.matmul %3, %0, %cst {dimension_numbers = #tpu.dot_dimension_numbers<[0], [0], [1], [1], [0, 1, 1, 1], [], []>} : vector<4x16xf32>, vector<4x512xf32>, vector<16x512xf32> -> vector<16x512xf32>
    %cst_10 = arith.constant dense<0.000000e+00> : vector<2x512xf32>
    %7 = tpu.matmul %5, %0, %cst_10 {dimension_numbers = #tpu.dot_dimension_numbers<[0], [0], [1], [1], [0, 1, 1, 1], [], []>} : vector<4x2xf32>, vector<4x512xf32>, vector<2x512xf32> -> vector<2x512xf32>
    %8 = vector.extract_strided_slice %6 {offsets = [0, 0], sizes = [16, 128], strides = [1, 1]} : vector<16x512xf32> to vector<16x128xf32>
    %9 = vector.extract_strided_slice %6 {offsets = [0, 128], sizes = [16, 128], strides = [1, 1]} : vector<16x512xf32> to vector<16x128xf32>
    %10 = vector.extract_strided_slice %6 {offsets = [0, 256], sizes = [16, 128], strides = [1, 1]} : vector<16x512xf32> to vector<16x128xf32>
    %11 = vector.extract_strided_slice %6 {offsets = [0, 384], sizes = [16, 128], strides = [1, 1]} : vector<16x512xf32> to vector<16x128xf32>
    %12 = vector.extract_strided_slice %7 {offsets = [0, 384], sizes = [1, 128], strides = [1, 1]} : vector<2x512xf32> to vector<1x128xf32>
    %13 = vector.extract_strided_slice %7 {offsets = [1, 0], sizes = [1, 128], strides = [1, 1]} : vector<2x512xf32> to vector<1x128xf32>
    %14 = tpu.iota {dimensions = array<i32: 0>} : vector<16x1xi32>
    %c0_i32 = arith.constant 0 : i32
    %15 = vector.broadcast %c0_i32 : i32 to vector<16x1xi32>
    %16 = arith.cmpi eq, %14, %15 : vector<16x1xi32>
    %c1_i32 = arith.constant 1 : i32
    %17 = tpu.dynamic_rotate %11 by %c1_i32 dim 0 : vector<16x128xf32>, i32 -> vector<16x128xf32>
    %18 = vector.shape_cast %16 : vector<16x1xi1> to vector<16x1xi1>
    %19 = vector.broadcast %18 : vector<16x1xi1> to vector<16x128xi1>
    %20 = vector.shape_cast %12 : vector<1x128xf32> to vector<1x128xf32>
    %21 = vector.broadcast %20 : vector<1x128xf32> to vector<16x128xf32>
    %22 = arith.select %19, %21, %17 : vector<16x128xi1>, vector<16x128xf32>
    %c15_i32 = arith.constant 15 : i32
    %23 = vector.broadcast %c15_i32 : i32 to vector<16x1xi32>
    %24 = arith.cmpi eq, %14, %23 : vector<16x1xi32>
    %c15_i32_11 = arith.constant 15 : i32
    %25 = tpu.dynamic_rotate %8 by %c15_i32_11 dim 0 : vector<16x128xf32>, i32 -> vector<16x128xf32>
    %26 = vector.shape_cast %24 : vector<16x1xi1> to vector<16x1xi1>
    %27 = vector.broadcast %26 : vector<16x1xi1> to vector<16x128xi1>
    %28 = vector.shape_cast %13 : vector<1x128xf32> to vector<1x128xf32>
    %29 = vector.broadcast %28 : vector<1x128xf32> to vector<16x128xf32>
    %30 = arith.select %27, %29, %25 : vector<16x128xi1>, vector<16x128xf32>
    %31 = arith.addf %9, %22 : vector<16x128xf32>
    %32 = vector.broadcast %1 : vector<1x128xf32> to vector<16x128xf32>
    %33 = arith.addf %31, %32 : vector<16x128xf32>
    %34 = arith.addf %10, %30 : vector<16x128xf32>
    %35 = vector.broadcast %1 : vector<1x128xf32> to vector<16x128xf32>
    %36 = arith.addf %34, %35 : vector<16x128xf32>
    %37 = vector.extract_strided_slice %33 {offsets = [0, 0], sizes = [16, 4], strides = [1, 1]} : vector<16x128xf32> to vector<16x4xf32>
    %c0_12 = arith.constant 0 : index
    %c0_13 = arith.constant 0 : index
    %c0_14 = arith.constant 0 : index
    %c0_15 = arith.constant 0 : index
    %38 = vector.load %arg6[%c0_12, %c0_13, %c0_14, %c0_15] : memref<1x2x16x4xf32, #tpu.memory_space<vmem>>, vector<1x1x16x4xf32>
    %39 = vector.shape_cast %38 : vector<1x1x16x4xf32> to vector<16x4xf32>
    %40 = vector.shape_cast %37 : vector<16x4xf32> to vector<1x1x16x4xf32>
    tpu.vector_store %arg6[%c0_12, %c0_13, %c0_14, %c0_15], %40 {strides = array<i32>} : memref<1x2x16x4xf32, #tpu.memory_space<vmem>>, vector<1x1x16x4xf32>,
    %41 = vector.extract_strided_slice %36 {offsets = [0, 0], sizes = [16, 4], strides = [1, 1]} : vector<16x128xf32> to vector<16x4xf32>
    %c0_16 = arith.constant 0 : index
    %c1 = arith.constant 1 : index
    %c0_17 = arith.constant 0 : index
    %c0_18 = arith.constant 0 : index
    %42 = vector.load %arg6[%c0_16, %c1, %c0_17, %c0_18] : memref<1x2x16x4xf32, #tpu.memory_space<vmem>>, vector<1x1x16x4xf32>
    %43 = vector.shape_cast %42 : vector<1x1x16x4xf32> to vector<16x4xf32>
    %44 = vector.shape_cast %41 : vector<16x4xf32> to vector<1x1x16x4xf32>
    tpu.vector_store %arg6[%c0_16, %c1, %c0_17, %c0_18], %44 {strides = array<i32>} : memref<1x2x16x4xf32, #tpu.memory_space<vmem>>, vector<1x1x16x4xf32>,
    return
  }
  func.func @transform_0(%arg0: i32, %arg1: i32) -> (i32, i32, i32) {
    %c0_i32 = arith.constant 0 : i32
    %c0_i32_0 = arith.constant 0 : i32
    return %arg0, %c0_i32, %arg1 : i32, i32, i32
  }
  func.func @transform_1(%arg0: i32, %arg1: i32) -> (i32, i32, i32, i32) {
    %c0_i32 = arith.constant 0 : i32
    %c0_i32_0 = arith.constant 0 : i32
    %c0_i32_1 = arith.constant 0 : i32
    return %arg0, %arg1, %c0_i32, %c0_i32_0 : i32, i32, i32, i32
  }
  func.func @transform_2(%arg0: i32, %arg1: i32) -> (i32, i32) {
    %c0_i32 = arith.constant 0 : i32
    %c0_i32_0 = arith.constant 0 : i32
    %c0_i32_1 = arith.constant 0 : i32
    return %c0_i32, %c0_i32_0 : i32, i32
  }
  func.func @transform_3(%arg0: i32, %arg1: i32) -> (i32, i32) {
    %c0_i32 = arith.constant 0 : i32
    %c0_i32_0 = arith.constant 0 : i32
    %c0_i32_1 = arith.constant 0 : i32
    return %c0_i32, %c0_i32_0 : i32, i32
  }
  func.func @transform_4(%arg0: i32, %arg1: i32) -> (i32, i32, i32, i32) {
    %c0_i32 = arith.constant 0 : i32
    %c0_i32_0 = arith.constant 0 : i32
    %c0_i32_1 = arith.constant 0 : i32
    return %arg0, %c0_i32, %arg1, %c0_i32_0 : i32, i32, i32, i32
  }
}

</mosaic_0001>

<bundles_post_ra>
// kernel: tpu_custom_call.1
= control target key start
LH: loop header
LB: loop body
LE: loop exit
PB: predicated region body
PF: predicated region fallthrough
CT: control target
= control target key end

     0   :  { %9 = vsyncpa [#allocation3], 0  ;;  %s1176_s0 = inlined_call_operand.hbm [shape: f32[2,4,16], index: 0, kind: input, shape index: {}]   ;;  %s1177_s1 = inlined_call_operand.vmem [shape: f32[2,1,4,2], index: 1, kind: input, shape index: {}]   ;;  %s1178_s2 = inlined_call_operand.vmem [shape: f32[4,512], index: 2, kind: input, shape index: {}]   ;;  %s1179_s3 = inlined_call_operand.vmem [shape: f32[1,128], index: 3, kind: input, shape index: {}]   ;;  %s1180_s4 = inlined_call_operand.vmem [shape: f32[2,2,16,4], index: 4, kind: output, shape index: {}]  }
   0x1   :  { %11 = vsyncpa [#allocation3 + $0x1], 0  ;;  %s1017_s15 = smov 0   ;;  %s1019_s16 = smov 0  }
   0x2   :  { %s1021_s17 = smov 0   ;;  %s1023_s18 = smov 0  }
   0x3   :  { %s1025_s19 = smov 0   ;;  %s1027_s20 = smov 0  }
   0x4 LB: > { %s819_s21 = sadd.s32 4294967295, %s988_s20   ;;  %s29_s22 = sadd.s32 1, %s984_s19  ;;  %s988_s20 = sphi %s1027_s20, %s17_s20   ;;  %s984_s19 = sphi %s1025_s19, %s1190_s19   ;;  %s980_s18 = sphi %s1023_s18, %s1189_s18   ;;  %s976_s17 = sphi %s1021_s17, %s1188_s17   ;;  %s972_s16 = sphi %s1019_s16, %s1187_s16   ;;  %s968_s15 = sphi %s1017_s15, %s1186_s15  }
   0x5   : > { %p31_p0 = scmp.ge.s32.totalorder %s29_s22, 2  ;;  %s38_s23 = sadd.s32 1, %s976_s17 }
   0x6   : > { %p45_p1 = scmp.ne.s32.totalorder %s976_s17, %s972_s16  ;;  %p46_p2 = scmp.eq.s32.totalorder %s988_s20, 0 }
   0x7   : > { %s1192_s22 = smov (%p31_p0, %s29_s22), 0  ;;  %p51_p4 = scmp.ne.s32.totalorder %s972_s16, %s968_s15 }
   0x8   : > { %p1053_p3 = por %p46_p2, %p45_p1  ;;  %s33_s25 = ssub.s32 %s984_s19, %s1192_s22 }
   0x9   : > { %p52_p5 = scmp.eq.s32.totalorder %s819_s21, 0  ;;  %p36_p6 = scmp.eq.s32.totalorder %s33_s25, 0 }
   0xa   : > { %p856_p8 = scmp.lt.s32.totalorder %s988_s20, 2  ;;  %s179_s28 = sand.u32 1, %s976_s17  }
   0xb   : > { %p1060_p7 = por %p52_p5, %p51_p4  ;;  %s824_s29 = sshll.u32 %s984_s19, 6 }
   0xc   : > { %s1066_s27 = scalar_select %p36_p6, %s976_s17, %s38_s23  }
   0xd   : > { %s823_s30 = sshll.u32 %s179_s28, 2  ;;  %s1073_s7 = scalar_lea.hbm %s1176_s0, %s824_s29 }
   0xe   : > { %s183_s8 = scalar_lea.vmem [#allocation2], %s823_s30  ;;  %p1077_p9 = pnand %p856_p8, %p1053_p3 }
   0xf   : > { %s191_s9 = sshll.u32 %s183_s8, 4  ;;  %s180_s11 = scalar_lea.sflag [#allocation3], %s179_s28  ;;  %s1081_s9 = int_to_ptr.vmem [resolvable:$true] %s191_s9 }
  0x10   : > { %s908_s12 = scalar_lea.hbm %s1073_s7, 64  ;;  %p910_p13 = pneg %p1077_p9 }
  0x11   : > { %p909_p12 = scmp.ne.s32.totalorder %s1073_s7, %s908_s12  ;;  %s913_s15 = scalar_lea.hbm %s1176_s0, 128 }
  0x12   : > { %p914_p2 = scmp.lt.u32.totalorder %s1073_s7, %s1176_s0  ;;  %p915_p3 = scmp.lt.u32.totalorder %s913_s15, %s908_s12 }
  0x13   : > { %p911_p0 = pnand %p910_p13, %p909_p12  ;;  %p917_p5 = scmp.lt.u32.totalorder %s908_s12, %s1073_s7 }
  0x14   : > { %p916_p4 = por %p915_p3, %p914_p2 }
  0x15   : > { %p912_p1 = pneg %p911_p0 }
  0x16   : > { %p918_p6 = por %p917_p5, %p916_p4 }
  0x18   : > { %p919_p8 = pnand %p918_p6, %p912_p1 }
  0x1a   : > { %922 = shalt.err (!%p919_p8)
}
  0x1b   : > { %s923_s24 = scalar_lea.vmem %s1081_s9, 64  ;;  %s990_s25 = smov [#allocation2]  }
  0x1c   : > { %p924_p12 = scmp.ne.s32.totalorder %s1081_s9, %s923_s24  ;;  %s928_s28 = sshll.u32 %s990_s25, 4  ;;  %s929_s28 = int_to_ptr.vmem [resolvable:$false] %s928_s28 }
  0x1d   : > { %s930_s29 = scalar_lea.vmem %s929_s28, 128  ;;  %p931_p11 = scmp.lt.s32.totalorder %s1081_s9, %s929_s28 }
  0x1e   : > { %p926_p0 = pnand %p924_p12, %p910_p13  ;;  %p932_p2 = scmp.lt.s32.totalorder %s930_s29, %s923_s24 }
  0x20   : > { %p927_p10 = pneg %p926_p0  ;;  %p933_p3 = por %p932_p2, %p931_p11 }
  0x22   : > { %p934_p4 = pnand %p933_p3, %p927_p10 }
  0x24   : > { %937 = shalt.err (!%p934_p4)
}
  0x25   : > { %855 = dma.hbm_to_vmem [thread:$0]  (!%p1077_p9), %s1073_s7, 64, %s1081_s9, %s180_s11  }
  0x26   : > { %p1184_p1 = scmp.lt.s32.totalorder %s988_s20, 3  ;;  %p1185_p5 = scmp.ge.s32.totalorder %s988_s20, 1 }
  0x28   : > { %p207_p13 = pnand %p1185_p5, %p1184_p1 }
  0x29   : > { %s212_s30 = sand.u32 (!%p207_p13), 1, %s972_s16  }
  0x2a   : > { %210 = sbr.rel (%p207_p13) target bundleno = 410 (0x19a), region = 36  ;;  %s826_s5 = sshll.u32 (!%p207_p13), %s212_s30, 2 }
  0x2b   : > { %s213_s6 = scalar_lea.sflag (!%p207_p13), [#allocation3], %s212_s30  ;;  %s216_s8 = scalar_lea.vmem (!%p207_p13), [#allocation2], %s826_s5 }
  0x31   : > { %963 = dma.done.wait (%p1060_p7), %s213_s6, 64  }
  0x32   : > { %965 = vsyncadd (%p1060_p7), %s213_s6, 4294967232  ;;  %p252_p10 = scmp.lt.s32.totalorder %s980_s18, 1  ;;  %v991_v0 = vmov 0.0   ;;  %v272_v1 = vld [vmem:[%s216_s8] sm:$0xf]  ;;  %v270_v2 = vld [vmem:[%s1178_s2 + $0x8] sm:$0xff]  ;;  %v655_v10 = vlaneseq }
  0x33   : > { %390 = vmatprep.mubr.f32.mxu0 %v991_v0  ;;  %467 = vmatprep.mubr.f32.mxu1 %v991_v0  ;;  %vm317_vm0 = vcmask 1043456   ;;  %v309_v3 = vcombine.high %v270_v2, %v270_v2  ;;  %v269_v4 = vld [vmem:[%s1178_s2] sm:$0xff]  ;;  %vm310_vm1 = vcmask 31744  }
  0x34   : > { %s1194_s18 = smov (!%p252_p10, %s980_s18), 1  ;;  %274 = vxpose.xlu0.b32.start.end [1/1] (short) (narrow) %v272_v1, 16  ;;  %v308_v5 = vcombine.high %v269_v4, %v269_v4  ;;  %v656_v13 = vshrl.u32 %v655_v10, 7  ;;  %v844_v27 = vld [vmem:[%s1179_s3] ss:$0 sm:$0xff] }
  0x35   : > { %s827_s7 = sshll.u32 %s1194_s18, 2  ;;  %834 = vmatprep.subr.msk.mxu1 %vm317_vm0, %v309_v3  ;;  %s849_s15 = sshll.u32 %s1194_s18, 5 }
  0x36   : > { %s258_s11 = scalar_lea.vmem %s1177_s1, %s827_s7  ;;  %830 = vmatprep.subr.msk.mxu0 %vm317_vm0, %v308_v5  ;;  %835 = vmatpush1.msk.msra.mxu1 %vm317_vm0, %v270_v2  ;;  %vm679_vm2 = vcmp.lt.s32.totalorder %v656_v13, 7  ;;  %v657_v18 = vadd.s32 8, %v656_v13  ;;  %vm662_vm3 = vcmp.lt.s32.totalorder %v656_v13, 1  ;;  %v688_v23 = vsub.s32 1, %v656_v13  ;;  %s267_s28 = scalar_lea.vmem %s1180_s4, %s849_s15 }
  0x37   : > { %v273_v6 = vld [vmem:[%s258_s11] sm:$0xf]  ;;  %831 = vmatpush1.msk.msra.mxu0 %vm317_vm0, %v269_v4  ;;  %841 = vmatprep.subr.msk.mxu1 %vm317_vm0, %v309_v3  ;;  %v671_v26 = vsub.s32 0, %v656_v13  ;;  %vm658_vm5 = vcmp.eq.s32.totalorder %v656_v13, 0 }
  0x38   : > { %838 = vmatprep.subr.msk.mxu0 %vm317_vm0, %v308_v5  ;;  %vm676_vm4 = vcmp.eq.s32.totalorder %v657_v18, 15 }
  0x39   : > { %480 = vxpose.xlu0.b32.start.end [1/1] (short) (narrow) %v273_v6, 8 }
  0xb4   : > { %v290_v7 = vpop.trf.xlu0 }
  0xb5   : > { %832 = vmatmul.mubr.msk.f32.vlgmr.msra.gmra.mrb[0].mxu0 %vm310_vm1, %v290_v7  ;;  %836 = vmatmul.mubr.msk.f32.vlgmr.msra.gmra.mrb[0].mxu1 %vm310_vm1, %v290_v7 }
  0xb6   : > { %842 = vmatpush1.msk.msra.mxu1 %vm317_vm0, %v270_v2  ;;  %839 = vmatpush1.msk.msra.mxu0 %vm317_vm0, %v269_v4 }
  0xb7   : > { %396 = vmatprep.mubr.f32.mxu0 %v991_v0  ;;  %473 = vmatprep.mubr.f32.mxu1 %v991_v0 }
  0xb8   : > { %v291_v8 = vpop.trf.xlu0 }
  0xb9   : > { %833 = vmatmul.mubr.msk.f32.gmra.mrb[2].mxu0 %vm310_vm1, %v291_v8  ;;  %837 = vmatmul.mubr.msk.f32.gmra.mrb[2].mxu1 %vm310_vm1, %v291_v8 }
  0xba   : > { %579 = vmatprep.mubr.f32.mxu0 %v991_v0  ;;  %649 = vmatprep.mubr.f32.mxu1 %v991_v0 }
  0xbc   : > { %v496_v9 = vpop.trf.xlu0 }
  0xbd   : > { %840 = vmatmul.mubr.msk.f32.vlgmr.msra.gmra.mrb[4].mxu0 %vm310_vm1, %v496_v9  ;;  %843 = vmatmul.mubr.msk.f32.vlgmr.msra.gmra.mrb[4].mxu1 %vm310_vm1, %v496_v9 }
 0x188   : > { %v392_v11 = vpop.f32.mrb[0].mxu0  ;;  %v469_v12 = vpop.f32.mrb[0].mxu1 }
 0x189   : > { %v394_v14 = vpop.f32.mrb[1].mxu0  ;;  %v471_v15 = vpop.f32.mrb[1].mxu1  ;;  %v677_v19 = vrot.slane %v392_v11, 1 }
 0x18a   : > { %v660_v24 = vrot.slane %v471_v15, 7 }
 0x18c   : > { %v398_v16 = vpop.f32.mrb[2].mxu0  ;;  %v475_v17 = vpop.f32.mrb[2].mxu1 }
 0x18d   : > { %v678_v20 = vrot.slane %v398_v16, 1  ;;  %v400_v21 = vpop.f32.mrb[3].mxu0  ;;  %v477_v22 = vpop.f32.mrb[3].mxu1 }
 0x18e   : > { %v661_v25 = vrot.slane %v477_v22, 7 }
 0x18f   : > { %v680_v28 = vsel %vm679_vm2, %v677_v19, %v678_v20  ;;  %v681_v29 = vsel %vm679_vm2, %v678_v20, %v677_v19 }
 0x190   : > { %v702_v30 = vadd.f32 %v680_v28, %v469_v12  ;;  %v663_v31 = vsel %vm662_vm3, %v660_v24, %v661_v25  ;;  %v664_v32 = vsel %vm662_vm3, %v661_v25, %v660_v24  ;;  %v581_v33 = vpop.f32.mrb[4].mxu0  ;;  %v651_v34 = vpop.f32.mrb[4].mxu1 }
 0x191   : > { %v693_v35 = vadd.f32 %v663_v31, %v400_v21  ;;  %v689_v36 = vrot.slane %v581_v33, %v688_v23  ;;  %v583_v37 = vpop.f32.mrb[5].mxu0  ;;  %v652_v38 = vpop.f32.mrb[5].mxu1 }
 0x192   : > { %v704_v39 = vadd.f32 %v844_v27, %v702_v30  ;;  %v672_v40 = vrot.slane %v652_v38, %v671_v26 }
 0x193   : > { %v701_v41 = vadd.f32 %v844_v27, %v693_v35  ;;  %v691_v42 = vsel %vm676_vm4, %v689_v36, %v681_v29 }
 0x194   : > { %845 = vst.msk [vmem:[%s267_s28 + $0x10] sm:$0xff] %vm310_vm1, %v704_v39  ;;  %v703_v43 = vadd.f32 %v691_v42, %v475_v17  ;;  %v673_v44 = vsel %vm658_vm5, %v672_v40, %v664_v32 }
 0x195   : > { %707 = vst.msk [vmem:[%s267_s28 + $0x8] sm:$0xff] %vm310_vm1, %v701_v41  ;;  %v692_v45 = vadd.f32 %v673_v44, %v394_v14 }
 0x196   : > { %v705_v46 = vadd.f32 %v844_v27, %v703_v43 }
 0x197   : > { %v700_v47 = vadd.f32 %v844_v27, %v692_v45 }
 0x198   : > { %846 = vst.msk [vmem:[%s267_s28 + $0x18] sm:$0xff] %vm310_vm1, %v705_v46 }
 0x199   : > { %706 = vst.msk [vmem:[%s267_s28] sm:$0xff] %vm310_vm1, %v700_v47 }
 0x19a PF: > { %s17_s20 = sadd.s32 1, %s988_s20   ;;  %s1186_s15 = smov %s972_s16 }
 0x19b   : > { %p14_p7 = scmp.ge.s32.totalorder %s17_s20, 4   ;;  %s1187_s16 = smov %s976_s17 }
 0x19c   : > { %s1188_s17 = smov %s1066_s27  ;;  %s1189_s18 = smov %s984_s19 }
 0x19d   : > { %s1190_s19 = smov %s1192_s22  ;;  %16 = sbr.rel (!%p14_p7) target bundleno = 4 (0x4), region = 80 }
 0x1a4   :  { %741 = vsyncpa [#allocation3], 1 }
 0x1a5   :  { %743 = vsyncpa [#allocation3 + $0x1], 1 }

</bundles_post_ra>
